<compile_context>
chip_gen: v6e
topology: v6e:2x2x1
jax: 0.10.0
libtpu: 0.0.40
codegen_flags: <defaults>
</compile_context>

<pallas_src>
import functools

import jax
import jax.numpy as jnp
from jax.experimental import pallas as pl
from jax.experimental.pallas import tpu as pltpu

_LANE = 128
_TARGET_ROWS = 512          # 512 x 128 x 4 B = 256 KiB per input tile


def _tomo_denoise_loss_kernel(x_ref, mu_ref, sig_ref, std_ref, out_ref,
                              acc_loss_ref, acc_std_ref, *, inv_n):
    k = pl.program_id(1)

    @pl.when(k == 0)
    def _init():
        acc_loss_ref[...] = jnp.zeros_like(acc_loss_ref)
        acc_std_ref[...] = jnp.zeros_like(acc_std_ref)

    x = x_ref[0]             # (TR, 128)
    mu = mu_ref[0]
    sig = sig_ref[0]
    std = std_ref[0]

    d = x - mu
    # Elementwise accumulation (VPU + EUP); 0.1*std is applied once at finalize.
    acc_loss_ref[...] += d * d / sig + jnp.log(sig)
    acc_std_ref[...] += std

    @pl.when(k == pl.num_programs(1) - 1)
    def _finalize():
        total = jnp.sum(acc_loss_ref[...]) - 0.1 * jnp.sum(acc_std_ref[...])
        out_ref[...] = jnp.full((1, 1, _LANE), total * inv_n,
                                dtype=out_ref.dtype)


def tomo_denoise_loss(noisy_in, mu, sigma, noise_std):
    """noisy_in, mu, sigma, noise_std: (B, C, H, W) float32 -> ((B, 1), stats)."""
    B = noisy_in.shape[0]
    n = int(noisy_in.size // B)                 # true elements per batch row

    # Tile geometry: (tr, 128) blocks, tr a multiple of 8, up to 512 rows.
    rows_needed = int(pl.cdiv(n, _LANE))
    tr = min(_TARGET_ROWS, rows_needed)
    tr = max(8, ((tr + 7) // 8) * 8)
    chunk_elems = tr * _LANE
    num_chunks = int(pl.cdiv(n, chunk_elems))
    n_pad = num_chunks * chunk_elems
    rows_pad = n_pad // _LANE

    def _prep(a, pad_value):
        flat = a.reshape(B, n).astype(jnp.float32)
        if n_pad > n:
            flat = jnp.pad(flat, ((0, 0), (0, n_pad - n)),
                           constant_values=pad_value)
        return flat.reshape(B, rows_pad, _LANE)

    # Neutral padding: (0-0)^2/1 + log(1) = 0 and std = 0 in the padded tail.
    x3 = _prep(noisy_in, 0.0)
    mu3 = _prep(mu, 0.0)
    sig3 = _prep(sigma, 1.0)
    std3 = _prep(noise_std, 0.0)

    in_spec = pl.BlockSpec((1, tr, _LANE), lambda b, k: (b, k, 0))
    out_spec = pl.BlockSpec((1, 1, _LANE), lambda b, k: (b, 0, 0))

    kernel = functools.partial(_tomo_denoise_loss_kernel, inv_n=1.0 / n)

    out3 = pl.pallas_call(
        kernel,
        out_shape=jax.ShapeDtypeStruct((B, 1, _LANE), jnp.float32),
        grid_spec=pltpu.PrefetchScalarGridSpec(
            num_scalar_prefetch=0,
            grid=(B, num_chunks),
            in_specs=[in_spec, in_spec, in_spec, in_spec],
            out_specs=out_spec,
            scratch_shapes=[pltpu.VMEM((tr, _LANE), jnp.float32),
                            pltpu.VMEM((tr, _LANE), jnp.float32)],
        ),
        compiler_params=pltpu.CompilerParams(
            dimension_semantics=("parallel", "arbitrary")),
        cost_estimate=pl.CostEstimate(
            flops=5 * B * n_pad,
            transcendentals=2 * B * n_pad,
            bytes_accessed=16 * B * n_pad + 4 * B * _LANE),
    )(x3, mu3, sig3, std3)

    final_loss = out3[:, 0, :1]                 # (B, 1); kernel store is lane-dense
    loss_stats = {'loss': final_loss}
    return final_loss, loss_stats


if __name__ == "__main__":
    key = jax.random.PRNGKey(0)
    k1, k2, k3, k4 = jax.random.split(key, 4)

    B, C, H, W = 2, 4, 16, 16  # small shapes consistent with the module's forward
    noisy_in = jax.random.normal(k1, (B, C, H, W), dtype=jnp.float32)
    mu = jax.random.normal(k2, (B, C, H, W), dtype=jnp.float32)
    # sigma must be positive (appears in division and log)
    sigma = jax.nn.softplus(jax.random.normal(k3, (B, C, H, W), dtype=jnp.float32)) + 0.1
    noise_std = jax.nn.softplus(jax.random.normal(k4, (B, C, H, W), dtype=jnp.float32))

    final_loss, loss_stats = tomo_denoise_loss(noisy_in, mu, sigma, noise_std)
    jax.block_until_ready(final_loss)

    # Reference check against plain JAX (same math as the PyTorch module).
    ref = ((noisy_in - mu) ** 2 / sigma + jnp.log(sigma) - 0.1 * noise_std)
    ref = ref.reshape(B, -1).mean(axis=1, keepdims=True)
    assert jnp.allclose(final_loss, ref, rtol=1e-5, atol=1e-5), (final_loss, ref)
    assert final_loss.shape == (B, 1)
    assert loss_stats['loss'] is final_loss

    print("KERNEL_OK")
</pallas_src>

<mosaic_0001>
module attributes {stable_mosaic.version = 11 : i64} {
  func.func @_tomo_denoise_loss_kernel(%arg0: i32, %arg1: i32, %arg2: memref<1x8x128xf32, #tpu.memory_space<vmem>>, %arg3: memref<1x8x128xf32, #tpu.memory_space<vmem>>, %arg4: memref<1x8x128xf32, #tpu.memory_space<vmem>>, %arg5: memref<1x8x128xf32, #tpu.memory_space<vmem>>, %arg6: memref<1x1x128xf32, #tpu.memory_space<vmem>>, %arg7: memref<8x128xf32, #tpu.memory_space<vmem>>, %arg8: memref<8x128xf32, #tpu.memory_space<vmem>>) attributes {dimension_semantics = [#tpu.dimension_semantics<parallel>, #tpu.dimension_semantics<arbitrary>], iteration_bounds = array<i64: 2, 1>, scalar_prefetch = 0 : i64, scratch_operands = 2 : i64, tpu.core_type = #tpu.core_type<tc>, window_params = [{transform_indices = @transform_0, window_bounds = array<i64: 1, 8, 128>}, {transform_indices = @transform_1, window_bounds = array<i64: 1, 8, 128>}, {transform_indices = @transform_2, window_bounds = array<i64: 1, 8, 128>}, {transform_indices = @transform_3, window_bounds = array<i64: 1, 8, 128>}, {transform_indices = @transform_4, window_bounds = array<i64: 1, 1, 128>}]} {
    %c0_i32 = arith.constant 0 : i32
    %0 = arith.cmpi eq, %arg1, %c0_i32 : i32
    %1 = arith.extui %0 : i1 to i32
    %c0_i32_0 = arith.constant 0 : i32
    %2 = arith.cmpi ne, %1, %c0_i32_0 : i32
    scf.if %2 {
      %cst = arith.constant 0.000000e+00 : f32
      %25 = vector.broadcast %cst : f32 to vector<8x128xf32>
      %c0_22 = arith.constant 0 : index
      %c0_23 = arith.constant 0 : index
      %26 = vector.load %arg7[%c0_22, %c0_23] : memref<8x128xf32, #tpu.memory_space<vmem>>, vector<8x128xf32>
      tpu.vector_store %arg7[%c0_22, %c0_23], %25 {strides = array<i32>} : memref<8x128xf32, #tpu.memory_space<vmem>>, vector<8x128xf32>,
      %cst_24 = arith.constant 0.000000e+00 : f32
      %27 = vector.broadcast %cst_24 : f32 to vector<8x128xf32>
      %c0_25 = arith.constant 0 : index
      %c0_26 = arith.constant 0 : index
      %28 = vector.load %arg8[%c0_25, %c0_26] : memref<8x128xf32, #tpu.memory_space<vmem>>, vector<8x128xf32>
      tpu.vector_store %arg8[%c0_25, %c0_26], %27 {strides = array<i32>} : memref<8x128xf32, #tpu.memory_space<vmem>>, vector<8x128xf32>,
    } else {
    }
    %c0 = arith.constant 0 : index
    %c0_1 = arith.constant 0 : index
    %c0_2 = arith.constant 0 : index
    %3 = vector.load %arg2[%c0, %c0_1, %c0_2] : memref<1x8x128xf32, #tpu.memory_space<vmem>>, vector<1x8x128xf32>
    %4 = vector.shape_cast %3 : vector<1x8x128xf32> to vector<8x128xf32>
    %c0_3 = arith.constant 0 : index
    %c0_4 = arith.constant 0 : index
    %c0_5 = arith.constant 0 : index
    %5 = vector.load %arg3[%c0_3, %c0_4, %c0_5] : memref<1x8x128xf32, #tpu.memory_space<vmem>>, vector<1x8x128xf32>
    %6 = vector.shape_cast %5 : vector<1x8x128xf32> to vector<8x128xf32>
    %c0_6 = arith.constant 0 : index
    %c0_7 = arith.constant 0 : index
    %c0_8 = arith.constant 0 : index
    %7 = vector.load %arg4[%c0_6, %c0_7, %c0_8] : memref<1x8x128xf32, #tpu.memory_space<vmem>>, vector<1x8x128xf32>
    %8 = vector.shape_cast %7 : vector<1x8x128xf32> to vector<8x128xf32>
    %c0_9 = arith.constant 0 : index
    %c0_10 = arith.constant 0 : index
    %c0_11 = arith.constant 0 : index
    %9 = vector.load %arg5[%c0_9, %c0_10, %c0_11] : memref<1x8x128xf32, #tpu.memory_space<vmem>>, vector<1x8x128xf32>
    %10 = vector.shape_cast %9 : vector<1x8x128xf32> to vector<8x128xf32>
    %11 = arith.subf %4, %6 : vector<8x128xf32>
    %c0_12 = arith.constant 0 : index
    %c0_13 = arith.constant 0 : index
    %12 = vector.load %arg7[%c0_12, %c0_13] : memref<8x128xf32, #tpu.memory_space<vmem>>, vector<8x128xf32>
    %13 = arith.mulf %11, %11 : vector<8x128xf32>
    %14 = arith.divf %13, %8 : vector<8x128xf32>
    %15 = math.log %8 : vector<8x128xf32>
    %16 = arith.addf %14, %15 : vector<8x128xf32>
    %17 = arith.addf %12, %16 : vector<8x128xf32>
    %c0_14 = arith.constant 0 : index
    %c0_15 = arith.constant 0 : index
    %18 = vector.load %arg7[%c0_14, %c0_15] : memref<8x128xf32, #tpu.memory_space<vmem>>, vector<8x128xf32>
    tpu.vector_store %arg7[%c0_14, %c0_15], %17 {strides = array<i32>} : memref<8x128xf32, #tpu.memory_space<vmem>>, vector<8x128xf32>,
    %c0_16 = arith.constant 0 : index
    %c0_17 = arith.constant 0 : index
    %19 = vector.load %arg8[%c0_16, %c0_17] : memref<8x128xf32, #tpu.memory_space<vmem>>, vector<8x128xf32>
    %20 = arith.addf %19, %10 : vector<8x128xf32>
    %c0_18 = arith.constant 0 : index
    %c0_19 = arith.constant 0 : index
    %21 = vector.load %arg8[%c0_18, %c0_19] : memref<8x128xf32, #tpu.memory_space<vmem>>, vector<8x128xf32>
    tpu.vector_store %arg8[%c0_18, %c0_19], %20 {strides = array<i32>} : memref<8x128xf32, #tpu.memory_space<vmem>>, vector<8x128xf32>,
    %c0_i32_20 = arith.constant 0 : i32
    %22 = arith.cmpi eq, %arg1, %c0_i32_20 : i32
    %23 = arith.extui %22 : i1 to i32
    %c0_i32_21 = arith.constant 0 : i32
    %24 = arith.cmpi ne, %23, %c0_i32_21 : i32
    scf.if %24 {
      %c0_22 = arith.constant 0 : index
      %c0_23 = arith.constant 0 : index
      %25 = vector.load %arg7[%c0_22, %c0_23] : memref<8x128xf32, #tpu.memory_space<vmem>>, vector<8x128xf32>
      %26 = vector.shape_cast %25 : vector<8x128xf32> to vector<1x8x128xf32>
      %cst = arith.constant dense<0.000000e+00> : vector<1xf32>
      %27 = vector.multi_reduction <add>, %26, %cst [1, 2] : vector<1x8x128xf32> to vector<1xf32>
      %28 = vector.shape_cast %27 : vector<1xf32> to vector<1x1x1xf32>
      %29 = vector.extract %28[0, 0, 0] : f32 from vector<1x1x1xf32>
      %c0_24 = arith.constant 0 : index
      %c0_25 = arith.constant 0 : index
      %30 = vector.load %arg8[%c0_24, %c0_25] : memref<8x128xf32, #tpu.memory_space<vmem>>, vector<8x128xf32>
      %31 = vector.shape_cast %30 : vector<8x128xf32> to vector<1x8x128xf32>
      %cst_26 = arith.constant dense<0.000000e+00> : vector<1xf32>
      %32 = vector.multi_reduction <add>, %31, %cst_26 [1, 2] : vector<1x8x128xf32> to vector<1xf32>
      %33 = vector.shape_cast %32 : vector<1xf32> to vector<1x1x1xf32>
      %34 = vector.extract %33[0, 0, 0] : f32 from vector<1x1x1xf32>
      %cst_27 = arith.constant 1.000000e-01 : f32
      %35 = arith.mulf %cst_27, %34 : f32
      %36 = arith.subf %29, %35 : f32
      %cst_28 = arith.constant 9.765625E-4 : f32
      %37 = arith.mulf %36, %cst_28 : f32
      %38 = vector.broadcast %37 : f32 to vector<1x1x128xf32>
      %c0_29 = arith.constant 0 : index
      %c0_30 = arith.constant 0 : index
      %c0_31 = arith.constant 0 : index
      %39 = vector.load %arg6[%c0_29, %c0_30, %c0_31] : memref<1x1x128xf32, #tpu.memory_space<vmem>>, vector<1x1x128xf32>
      tpu.vector_store %arg6[%c0_29, %c0_30, %c0_31], %38 {strides = array<i32>} : memref<1x1x128xf32, #tpu.memory_space<vmem>>, vector<1x1x128xf32>,
    } else {
    }
    return
  }
  func.func @transform_0(%arg0: i32, %arg1: i32) -> (i32, i32, i32) {
    %c0_i32 = arith.constant 0 : i32
    %c0_i32_0 = arith.constant 0 : i32
    return %arg0, %arg1, %c0_i32 : i32, i32, i32
  }
  func.func @transform_1(%arg0: i32, %arg1: i32) -> (i32, i32, i32) {
    %c0_i32 = arith.constant 0 : i32
    %c0_i32_0 = arith.constant 0 : i32
    return %arg0, %arg1, %c0_i32 : i32, i32, i32
  }
  func.func @transform_2(%arg0: i32, %arg1: i32) -> (i32, i32, i32) {
    %c0_i32 = arith.constant 0 : i32
    %c0_i32_0 = arith.constant 0 : i32
    return %arg0, %arg1, %c0_i32 : i32, i32, i32
  }
  func.func @transform_3(%arg0: i32, %arg1: i32) -> (i32, i32, i32) {
    %c0_i32 = arith.constant 0 : i32
    %c0_i32_0 = arith.constant 0 : i32
    return %arg0, %arg1, %c0_i32 : i32, i32, i32
  }
  func.func @transform_4(%arg0: i32, %arg1: i32) -> (i32, i32, i32) {
    %c0_i32 = arith.constant 0 : i32
    %c0_i32_0 = arith.constant 0 : i32
    %c0_i32_1 = arith.constant 0 : i32
    return %arg0, %c0_i32, %c0_i32_0 : i32, i32, i32
  }
}

</mosaic_0001>

<bundles_post_ra>
// kernel: tpu_custom_call.1
= control target key start
LH: loop header
LB: loop body
LE: loop exit
PB: predicated region body
PF: predicated region fallthrough
CT: control target
= control target key end

     0   :  { %s1104_s0 = inlined_call_operand.hbm [shape: f32[2,8,128], index: 0, kind: input, shape index: {}]   ;;  %s1105_s1 = inlined_call_operand.hbm [shape: f32[2,8,128], index: 1, kind: input, shape index: {}]   ;;  %s1106_s2 = inlined_call_operand.hbm [shape: f32[2,8,128], index: 2, kind: input, shape index: {}]   ;;  %s1107_s3 = inlined_call_operand.hbm [shape: f32[2,8,128], index: 3, kind: input, shape index: {}]   ;;  %s1108_s4 = inlined_call_operand.hbm [shape: f32[2,1,128], index: 4, kind: output, shape index: {}]  }
   0x1   :  { %1112 = sst [smem:[#allocation21_spill]] %s1105_s1 }
   0x2   :  { %9 = vsyncpa [#allocation5], 0 }
   0x3   :  { %11 = vsyncpa [#allocation5 + $0x1], 0 }
   0x4   :  { %12 = vsyncpa [#allocation8], 0 }
   0x5   :  { %14 = vsyncpa [#allocation8 + $0x1], 0 }
   0x6   :  { %15 = vsyncpa [#allocation11], 0 }
   0x7   :  { %17 = vsyncpa [#allocation11 + $0x1], 0 }
   0x8   :  { %18 = vsyncpa [#allocation6], 0 }
   0x9   :  { %20 = vsyncpa [#allocation6 + $0x1], 0  ;;  %s889_s15 = smov 0   ;;  %s891_s16 = smov 0  }
   0xa   :  { %s893_s17 = smov 0   ;;  %s895_s18 = smov 0  }
   0xb   :  { %s897_s19 = smov 0   ;;  %s899_s20 = smov 0  }
   0xc LB: > { %1113 = sst [smem:[#allocation17_spill]] %s845_s17  ;;  %s920_s21 = sadd.s32 4294967295, %s857_s20   ;;  %s857_s20 = sphi %s899_s20, %s26_s20   ;;  %s853_s19 = sphi %s897_s19, %s1128_s19   ;;  %s849_s18 = sphi %s895_s18, %s1127_s18   ;;  %s845_s17 = sphi %s893_s17, %s1126_s17   ;;  %s841_s16 = sphi %s891_s16, %s1130_s16   ;;  %s837_s15 = sphi %s889_s15, %s1129_s15  }
   0xd   : > { %1114 = sst [smem:[#allocation18_spill]] %s853_s19  ;;  %s553_s22 = sadd.s32 4294967294, %s857_s20  }
   0xe   : > { %s38_s23 = sadd.s32 1, %s853_s19  ;;  %s47_s24 = sadd.s32 1, %s845_s17 }
   0xf   : > { %p40_p0 = scmp.ge.s32.totalorder %s38_s23, 2  ;;  %p54_p1 = scmp.ne.s32.totalorder %s845_s17, %s841_s16 }
  0x10   : > { %p55_p2 = scmp.eq.s32.totalorder %s857_s20, 0  ;;  %p60_p3 = scmp.ne.s32.totalorder %s841_s16, %s837_s15 }
  0x11   : > { %s1132_s23 = smov (%p40_p0, %s38_s23), 0  ;;  %p61_p5 = scmp.eq.s32.totalorder %s920_s21, 0 }
  0x12   : > { %1115 = sst [smem:[#allocation19_spill]] %s1132_s23  ;;  %p932_p4 = por %p55_p2, %p54_p1 }
  0x13   : > { %s42_s26 = ssub.s32 %s853_s19, %s1132_s23  ;;  %p168_p6 = scmp.eq.s32.totalorder %s920_s21, 1 }
  0x14   : > { %p45_p7 = scmp.eq.s32.totalorder %s42_s26, 0  ;;  %p940_p8 = por %p61_p5, %p60_p3 }
  0x15   : > { %p944_p9 = por %p168_p6, %p54_p1  ;;  %p174_p10 = scmp.eq.s32.totalorder %s553_s22, 1 }
  0x16   : > { %s949_s29 = scalar_select %p45_p7, %s845_s17, %s47_s24  }
  0x17   : > { %p951_p11 = por %p174_p10, %p60_p3  ;;  %p603_p13 = scmp.lt.s32.totalorder %s857_s20, 2 }
  0x18   : > { %1119 = sst [smem:[#allocation20_spill]] %s949_s29  ;;  %s958_s5 = sand.u32 1, %s845_s17  }
  0x19   : > { %s961_s6 = sshll.u32 %s958_s5, 3  ;;  %s964_s7 = sshll.u32 %s853_s19, 7 }
  0x1a   : > { %p968_p0 = pnand %p603_p13, %p932_p4  ;;  %s213_s9 = sand.u32 1, %s857_s20  }
  0x1b   : > { %s1122_s1 = sld [smem:[#allocation21_spill]]  ;;  %s217_s13 = scalar_lea.vmem [#allocation7], %s961_s6 }
  0x1c   : > { %s225_s14 = sshll.u32 %s217_s13, 4  ;;  %p564_p1 = scmp.ge.s32.totalorder %s857_s20, 1  ;;  %s226_s14 = int_to_ptr.vmem [resolvable:$true] %s225_s14 }
  0x1d   : > { %p268_p2 = scmp.lt.s32.totalorder %s857_s20, 3  ;;  %s980_s22 = scalar_lea.sflag [#allocation8], %s213_s9 }
  0x1e   : > { %p659_p3 = pneg %p968_p0  ;;  %s670_s24 = scalar_lea.vmem %s226_s14, 128 }
  0x1f   : > { %p671_p4 = scmp.ne.s32.totalorder %s226_s14, %s670_s24  ;;  %s859_s25 = smov [#allocation7]  }
  0x20   : > { %s675_s26 = sshll.u32 %s859_s25, 4  ;;  %s676_s26 = int_to_ptr.vmem [resolvable:$false] %s675_s26 }
  0x21   : > { %s223_s12 = scalar_lea.hbm %s1122_s1, %s964_s7  ;;  %p673_p5 = pnand %p671_p4, %p659_p3 }
  0x22   : > { %s677_s10 = scalar_lea.vmem %s676_s26, 256  ;;  %p678_p7 = scmp.lt.s32.totalorder %s226_s14, %s676_s26 }
  0x23   : > { %p674_p6 = pneg %p673_p5  ;;  %p679_p10 = scmp.lt.s32.totalorder %s677_s10, %s670_s24 }
  0x25   : > { %p680_p13 = por %p679_p10, %p678_p7 }
  0x27   : > { %p681_p12 = pnand %p680_p13, %p674_p6 }
  0x29   : > { %684 = shalt.err (!%p681_p12)
}
  0x2a   : > { %592 = dma.hbm_to_vmem [thread:$0]  (!%p968_p0), %s223_s12, 128, %s226_s14, %s980_s22  }
  0x2b   : > { %p994_p4 = pnand %p564_p1, %p268_p2  ;;  %s204_s24 = scalar_lea.hbm %s1104_s0, %s964_s7 }
  0x2c   : > { %s198_s25 = scalar_lea.vmem [#allocation4], %s961_s6  ;;  %s242_s23 = scalar_lea.hbm %s1106_s2, %s964_s7 }
  0x2d   : > { %s206_s26 = sshll.u32 %s198_s25, 4  ;;  %s195_s19 = scalar_lea.sflag [#allocation5], %s958_s5  ;;  %s207_s26 = int_to_ptr.vmem [resolvable:$true] %s206_s26 }
  0x2e   : > { %s698_s29 = scalar_lea.vmem %s207_s26, 128  ;;  %s860_s12 = smov [#allocation4]  }
  0x2f   : > { %p699_p12 = scmp.ne.s32.totalorder %s207_s26, %s698_s29  ;;  %s703_s14 = sshll.u32 %s860_s12, 4  ;;  %s704_s14 = int_to_ptr.vmem [resolvable:$false] %s703_s14 }
  0x30   : > { %s705_s17 = scalar_lea.vmem %s704_s14, 256  ;;  %p706_p5 = scmp.lt.s32.totalorder %s207_s26, %s704_s14 }
  0x31   : > { %p701_p1 = pnand %p699_p12, %p659_p3  ;;  %p707_p6 = scmp.lt.s32.totalorder %s705_s17, %s698_s29 }
  0x33   : > { %p702_p2 = pneg %p701_p1  ;;  %p708_p7 = por %p707_p6, %p706_p5 }
  0x35   : > { %p709_p10 = pnand %p708_p7, %p702_p2 }
  0x37   : > { %712 = shalt.err (!%p709_p10)
}
  0x38   : > { %589 = dma.hbm_to_vmem [thread:$0]  (!%p968_p0), %s204_s24, 128, %s207_s26, %s195_s19  }
  0x39   : > { %s236_s1 = scalar_lea.vmem [#allocation9], %s961_s6  ;;  %s861_s25 = smov [#allocation9]  }
  0x3a   : > { %s244_s11 = sshll.u32 %s236_s1, 4  ;;  %s731_s10 = sshll.u32 %s861_s25, 4  ;;  %s245_s11 = int_to_ptr.vmem [resolvable:$true] %s244_s11  ;;  %s732_s10 = int_to_ptr.vmem [resolvable:$false] %s731_s10 }
  0x3b   : > { %s726_s13 = scalar_lea.vmem %s245_s11, 128  ;;  %s733_s17 = scalar_lea.vmem %s732_s10, 256 }
  0x3c   : > { %p727_p13 = scmp.ne.s32.totalorder %s245_s11, %s726_s13  ;;  %p734_p2 = scmp.lt.s32.totalorder %s245_s11, %s732_s10 }
  0x3d   : > { %p735_p5 = scmp.lt.s32.totalorder %s733_s17, %s726_s13 }
  0x3e   : > { %p729_p12 = pnand %p727_p13, %p659_p3 }
  0x3f   : > { %p736_p6 = por %p735_p5, %p734_p2 }
  0x40   : > { %p730_p1 = pneg %p729_p12 }
  0x42   : > { %p737_p7 = pnand %p736_p6, %p730_p1 }
  0x44   : > { %740 = shalt.err (!%p737_p7)
}
  0x45   : > { %595 = dma.hbm_to_vmem [thread:$0]  (!%p968_p0), %s242_s23, 128, %s245_s11, %s980_s22  }
  0x46   : > { %s261_s12 = scalar_lea.hbm %s1107_s3, %s964_s7  ;;  %s255_s14 = scalar_lea.vmem [#allocation10], %s961_s6 }
  0x47   : > { %s263_s1 = sshll.u32 %s255_s14, 4  ;;  %s252_s13 = scalar_lea.sflag [#allocation11], %s958_s5  ;;  %s264_s1 = int_to_ptr.vmem [resolvable:$true] %s263_s1 }
  0x48   : > { %s754_s25 = scalar_lea.vmem %s264_s1, 128  ;;  %s862_s10 = smov [#allocation10]  }
  0x49   : > { %p755_p10 = scmp.ne.s32.totalorder %s264_s1, %s754_s25  ;;  %s759_s17 = sshll.u32 %s862_s10, 4  ;;  %s760_s17 = int_to_ptr.vmem [resolvable:$false] %s759_s17 }
  0x4a   : > { %s761_s19 = scalar_lea.vmem %s760_s17, 256  ;;  %p762_p1 = scmp.lt.s32.totalorder %s264_s1, %s760_s17 }
  0x4b   : > { %p757_p13 = pnand %p755_p10, %p659_p3  ;;  %p763_p2 = scmp.lt.s32.totalorder %s761_s19, %s754_s25 }
  0x4d   : > { %p758_p12 = pneg %p757_p13  ;;  %p764_p5 = por %p763_p2, %p762_p1 }
  0x4f   : > { %p765_p6 = pnand %p764_p5, %p758_p12 }
  0x51   : > { %768 = shalt.err (!%p765_p6)
}
  0x52   : > { %598 = dma.hbm_to_vmem [thread:$0]  (!%p968_p0), %s261_s12, 128, %s264_s1, %s252_s13  }
  0x53   : > { %272 = sbr.rel (%p994_p4) target bundleno = 339 (0x153), region = 36  ;;  %s1039_s23 = sand.u32 (!%p994_p4), 1, %s841_s16  }
  0x54   : > { %s565_s5 = sshll.u32 (!%p994_p4), %s1039_s23, 3  ;;  %s275_s6 = scalar_lea.sflag (!%p994_p4), [#allocation5], %s1039_s23 }
  0x55   : > { %s278_s7 = scalar_lea.vmem (!%p994_p4), [#allocation4], %s565_s5 }
  0x58   : > { %820 = dma.done.wait (%p940_p8), %s275_s6, 128  }
  0x59   : > { %822 = vsyncadd (%p940_p8), %s275_s6, 4294967168  ;;  %s283_s8 = sand.u32 1, %s920_s21   ;;  %s287_s9 = scalar_lea.vmem [#allocation7], %s565_s5 }
  0x5a   : > { %s284_s22 = scalar_lea.sflag [#allocation8], %s283_s8 }
  0x5b   : > { %824 = dma.done.wait (%p940_p8), %s284_s22, 256  }
  0x5c   : > { %826 = vsyncadd (%p940_p8), %s284_s22, 4294967040  ;;  %s296_s11 = scalar_lea.vmem [#allocation9], %s565_s5  ;;  %s302_s29 = scalar_lea.sflag [#allocation11], %s1039_s23 }
  0x5d   : > { %s305_s24 = scalar_lea.vmem [#allocation10], %s565_s5 }
  0x5e   : > { %828 = dma.done.wait (%p940_p8), %s302_s29, 128  }
  0x5f   : > { %830 = vsyncadd (%p940_p8), %s302_s29, 4294967168  ;;  %v352_v0 = vld [vmem:[%s296_s11] sm:$0xff]  ;;  %v351_v2 = vld [vmem:[%s287_s9] sm:$0xff]  ;;  %s569_s12 = sshll.u32 %s849_s18, 4  ;;  %s343_s1 = scalar_lea.vmem [#allocation12], %s1039_s23 }
  0x60   : > { %653 = vrcp.f32 %v352_v0  ;;  %v350_v1 = vld [vmem:[%s278_s7] sm:$0xff]  ;;  %v353_v10 = vld [vmem:[%s305_s24] sm:$0xff]  ;;  %s408_s13 = sshll.u32 %s343_s1, 4  ;;  %s1062_s19 = scalar_lea.hbm %s1108_s4, %s569_s12  ;;  %s409_s13 = int_to_ptr.vmem [resolvable:$true] %s408_s13 }
  0x61   : > { %655 = vlog2.f32 %v352_v0  ;;  %v354_v3 = vsub.f32 %v350_v1, %v351_v2  ;;  %s396_s5 = scalar_lea.sflag [#allocation6], %s1039_s23  ;;  %s769_s6 = scalar_lea.vmem %s409_s13, 16 }
  0x62   : > { %p770_p8 = scmp.ne.s32.totalorder %s409_s13, %s769_s6  ;;  %s863_s7 = smov [#allocation12]  }
  0x63   : > { %v356_v4 = vmul.f32 %v354_v3, %v354_v3  ;;  %s773_s18 = sshll.u32 %s863_s7, 4  ;;  %s774_s18 = int_to_ptr.vmem [resolvable:$false] %s773_s18 }
  0x64   : > { %p771_p0 = pnand %p770_p8, %p944_p9  ;;  %s775_s8 = scalar_lea.vmem %s774_s18, 32 }
  0x65   : > { %p776_p4 = scmp.lt.s32.totalorder %s409_s13, %s774_s18  ;;  %p777_p7 = scmp.lt.s32.totalorder %s775_s8, %s769_s6 }
  0x66   : > { %p772_p3 = pneg %p771_p0 }
  0x67   : > { %p778_p10 = por %p777_p7, %p776_p4 }
  0x69   : > { %p779_p13 = pnand %p778_p10, %p772_p3 }
  0x6d   : > { %v654_v5 = vpop.eup %653 }
  0x6e   : > { %v656_v6 = vpop.eup %655  ;;  %v358_v7 = vmul.f32 %v654_v5, %v356_v4 }
  0x6f   : > { %v360_v8 = vmul.f32 0.6931472, %v656_v6 }
  0x71   : > { %v361_v9 = vadd.f32 %v360_v8, %v358_v7 }
  0x73   : > { %371 = vadd.xlane.f32.xlu0 %v361_v9 }
  0x77   : > { %381 = vadd.xlane.f32.xlu0 %v353_v10 }
  0xfc   : > { %v372_v11 = vpop.xlane.xlu0 %371 }
  0xfd   : > { %v373_v12 = vrot.slane %v372_v11, 4 }
  0xff   : > { %v374_v13 = vadd.f32 %v373_v12, %v372_v11 }
 0x100   : > { %v382_v14 = vpop.xlane.xlu0 %381 }
 0x101   : > { %v375_v15 = vrot.slane %v374_v13, 2  ;;  %v383_v16 = vrot.slane %v382_v14, 4 }
 0x103   : > { %v384_v17 = vadd.f32 %v383_v16, %v382_v14  ;;  %v376_v18 = vadd.f32 %v375_v15, %v374_v13 }
 0x105   : > { %v385_v19 = vrot.slane %v384_v17, 2  ;;  %v377_v20 = vrot.slane %v376_v18, 1 }
 0x107   : > { %v386_v21 = vadd.f32 %v385_v19, %v384_v17  ;;  %v378_v22 = vadd.f32 %v377_v20, %v376_v18 }
 0x109   : > { %572 = vpush %v378_v22  ;;  %v387_v23 = vrot.slane %v386_v21, 1 }
 0x10b   : > { %v388_v24 = vadd.f32 %v387_v23, %v386_v21 }
 0x10d   : > { %574 = vpush %v388_v24 }
 0x13a   : > { %s573_s21 = spop %572 }
 0x13e   : > { %s575_s27 = spop %574 }
 0x13f   : > { %s390_s26 = smul.f32 0.1, %s575_s27 }
 0x141   : > { %s391_s14 = ssub.f32 %s573_s21, %s390_s26 }
 0x143   : > { %s392_s25 = smul.f32 0.0009765625, %s391_s14 }
 0x145   : > { %v393_v25 = vstv %s392_s25 }
 0x146   : > { %394 = vst [vmem:[%s343_s1] sm:$0x1] %v393_v25 }
 0x147   : > { %782 = shalt.err (!%p779_p13)
}
 0x148   : > { %s783_s22 = scalar_lea.hbm %s1062_s19, 16  ;;  %s787_s11 = scalar_lea.hbm %s1108_s4, 32 }
 0x149   : > { %p784_p12 = scmp.ne.s32.totalorder %s1062_s19, %s783_s22  ;;  %p788_p5 = scmp.lt.s32.totalorder %s1062_s19, %s1108_s4 }
 0x14a   : > { %p789_p6 = scmp.lt.s32.totalorder %s787_s11, %s783_s22 }
 0x14b   : > { %p785_p1 = pnand %p784_p12, %p944_p9 }
 0x14c   : > { %p790_p8 = por %p789_p6, %p788_p5 }
 0x14d   : > { %p786_p2 = pneg %p785_p1 }
 0x14f   : > { %p791_p0 = pnand %p790_p8, %p786_p2 }
 0x151   : > { %794 = shalt.err (!%p791_p0)
}
 0x152   : > { %584 = dma.vmem_to_hbm [thread:$0]  (%p944_p9), %s409_s13, 16, %s1062_s19, %s396_s5  }
 0x153 PF: > { %s420_s21 = sand.u32 1, %s837_s15   ;;  %p1124_p3 = scmp.ge.s32.totalorder %s857_s20, 2 }
 0x154   : > { %s421_s27 = scalar_lea.sflag [#allocation6], %s420_s21 }
 0x155   : > { %p600_p4 = pnand %p1124_p3, %p951_p11 }
 0x157   : > { %p601_p7 = pneg %p600_p4 }
 0x159   : > { %832 = dma.done.wait (%p601_p7), %s421_s27, 16  }
 0x15a   : > { %834 = vsyncadd (%p601_p7), %s421_s27, 4294967280  ;;  %s26_s20 = sadd.s32 1, %s857_s20   ;;  %s1125_s26 = sld [smem:[#allocation17_spill]] }
 0x15b   : > { %p23_p10 = scmp.ge.s32.totalorder %s26_s20, 4   ;;  %s1126_s17 = sld [smem:[#allocation20_spill]] }
 0x15c   : > { %s1127_s18 = sld [smem:[#allocation18_spill]]  ;;  %s1129_s15 = smov %s841_s16 }
 0x15d   : > { %s1128_s19 = sld [smem:[#allocation19_spill]]  ;;  %25 = sbr.rel (!%p23_p10) target bundleno = 12 (0xc), region = 126 }
 0x160   : > { %s1130_s16 = smov %s1125_s26 }
 0x162   :  { %425 = vsyncpa [#allocation5], 1 }
 0x163   :  { %427 = vsyncpa [#allocation5 + $0x1], 1 }
 0x164   :  { %428 = vsyncpa [#allocation8], 1 }
 0x165   :  { %430 = vsyncpa [#allocation8 + $0x1], 1 }
 0x166   :  { %431 = vsyncpa [#allocation11], 1 }
 0x167   :  { %433 = vsyncpa [#allocation11 + $0x1], 1 }
 0x168   :  { %434 = vsyncpa [#allocation6], 1 }
 0x169   :  { %436 = vsyncpa [#allocation6 + $0x1], 1 }

</bundles_post_ra>
